<compile_context>
chip_gen: v7x
topology: tpu7x:2x2x1
jax: 0.10.0
libtpu: 0.0.40
codegen_flags: <defaults>
</compile_context>

<pallas_src>
import jax
import jax.numpy as jnp
from jax.experimental import pallas as pl
from jax.experimental.pallas import tpu as pltpu

_LANES = 512            # wide, lane-dense rows -> unmasked stores, long DMA bursts
_MAX_TILE_ROWS = 512    # 512 x 512 x 4B = 1 MiB per f32 tile (fits v5e scoped VMEM
                        # comfortably with double-buffered in + out)


def _noiser_kernel(seed_ref, ab_ref, x_ref, o_ref):
    # seed_ref: SMEM int32 (1,)
    # ab_ref:   SMEM float32 (2,) -> [a = scale*std*sqrt(2), b = scale*mean]
    # x_ref/o_ref: VMEM (tile_rows, _LANES) in the input dtype
    tile_rows, lanes = x_ref.shape

    # ---- global element index for this tile (counter-based PRNG) ----
    row = jax.lax.broadcasted_iota(jnp.int32, (tile_rows, lanes), 0)
    col = jax.lax.broadcasted_iota(jnp.int32, (tile_rows, lanes), 1)
    base = pl.program_id(0) * tile_rows
    gidx = ((base + row) * lanes + col).astype(jnp.uint32)

    seed_u = seed_ref[0].astype(jnp.uint32)

    # ---- splitmix32-style stateless hash -> one 32-bit draw per element ----
    h = gidx + seed_u * jnp.uint32(0x9E3779B1) + jnp.uint32(0x85EBCA6B)
    h = (h ^ (h >> 16)) * jnp.uint32(0x85EBCA6B)
    h = (h ^ (h >> 13)) * jnp.uint32(0xC2B2AE35)
    h = h ^ (h >> 16)

    # ---- uniform in (0,1), strictly inside, 24-bit mantissa ----
    r24 = (h >> 8).astype(jnp.int32).astype(jnp.float32)          # [0, 2^24)
    u = (r24 + 0.5) * (1.0 / 16777216.0)                          # (0, 1)
    t = 2.0 * u - 1.0                                             # (-1, 1)

    # ---- erfinv(t) via Giles (2010) single-precision approximation ----
    w = -jnp.log((1.0 - t) * (1.0 + t))                           # > 0 always
    ws = w - 2.5
    wb = jnp.sqrt(w) - 3.0

    p_s = jnp.float32(2.81022636e-08)
    for c in (3.43273939e-07, -3.5233877e-06, -4.39150654e-06, 2.1858087e-04,
              -1.25372503e-03, -4.17768164e-03, 2.46640727e-01, 1.50140941e+00):
        p_s = p_s * ws + jnp.float32(c)

    p_b = jnp.float32(-2.00214257e-04)
    for c in (1.00950558e-04, 1.34934322e-03, -3.67342844e-03, 5.73950773e-03,
              -7.6224613e-03, 9.43887047e-03, 1.00167406e+00, 2.83297682e+00):
        p_b = p_b * wb + jnp.float32(c)

    erfinv = jnp.where(w < 5.0, p_s, p_b) * t                     # erfinv(t)

    # ---- out = x + a*erfinv + b  (a already carries sqrt(2)*scale*std) ----
    a = ab_ref[0]
    b = ab_ref[1]
    xv = x_ref[...].astype(jnp.float32)
    o_ref[...] = (xv + erfinv * a + b).astype(o_ref.dtype)


def ct_noiser_parametric(x, normal_scale, normal_mean, normal_std, seed=0):
    """Additive Gaussian CT noise, matching CTNoiserParametric.forward."""
    orig_shape = x.shape
    dtype = x.dtype

    total = x.size
    pad = (-total) % _LANES
    flat = jnp.reshape(x, (total,))
    if pad:  # only pay the pad pass when the size is ragged
        flat = jnp.pad(flat, (0, pad))
    rows = (total + pad) // _LANES
    x2d = jnp.reshape(flat, (rows, _LANES))

    tile_rows = _MAX_TILE_ROWS if rows >= _MAX_TILE_ROWS else rows
    grid = (pl.cdiv(rows, tile_rows),)

    # Fold affine constants: out = x + a*erfinv(u) + b
    a = jnp.asarray(normal_scale, jnp.float32) * jnp.asarray(normal_std, jnp.float32) \
        * jnp.float32(1.4142135623730951)
    b = jnp.asarray(normal_scale, jnp.float32) * jnp.asarray(normal_mean, jnp.float32)
    ab = jnp.stack([a, b]).astype(jnp.float32)
    seed_arr = jnp.asarray([seed], dtype=jnp.int32)

    out2d = pl.pallas_call(
        _noiser_kernel,
        out_shape=jax.ShapeDtypeStruct((rows, _LANES), dtype),
        grid=grid,
        in_specs=[
            pl.BlockSpec(memory_space=pltpu.MemorySpace.SMEM),   # seed (1,)
            pl.BlockSpec(memory_space=pltpu.MemorySpace.SMEM),   # [a, b]
            pl.BlockSpec((tile_rows, _LANES), lambda i: (i, 0)),  # x tile
        ],
        out_specs=pl.BlockSpec((tile_rows, _LANES), lambda i: (i, 0)),
        compiler_params=pltpu.CompilerParams(
            dimension_semantics=("parallel",),        # use both TCs on v7x
            vmem_limit_bytes=32 * 1024 * 1024,        # safe on v5e/v6e/v7x
        ),
    )(seed_arr, ab, x2d)

    out = jnp.reshape(out2d, (rows * _LANES,))
    if pad:
        out = out[:total]
    return jnp.reshape(out, orig_shape)


if __name__ == "__main__":
    key = jax.random.PRNGKey(0)
    kx, ks, km, kd = jax.random.split(key, 4)

    # Parameter init mirroring the module's __init__:
    #   normal_scale = |randn() * 0.02|
    #   normal_mean  = |rand()  * 0.02|
    #   normal_std   = |rand()  * 0.05 + 0.05|
    normal_scale = jnp.abs(jax.random.normal(ks, ()) * 0.02)
    normal_mean = jnp.abs(jax.random.uniform(km, ()) * 0.02)
    normal_std = jnp.abs(jax.random.uniform(kd, ()) * 0.05 + 0.05)

    # Input: NCHW, small shape.
    x = jax.random.normal(kx, (2, 4, 16, 16), dtype=jnp.float32)

    out = ct_noiser_parametric(x, normal_scale, normal_mean, normal_std, seed=1234)
    out = jax.block_until_ready(out)

    assert out.shape == x.shape and out.dtype == x.dtype
    resid = out - x
    # Noise must be non-zero and bounded by scale*(z_max*std + mean) with z_max ~ 5.4.
    assert bool(jnp.any(resid != 0.0))
    bound = float(normal_scale) * (6.0 * float(normal_std) + float(normal_mean)) + 1e-5
    assert bool(jnp.all(jnp.abs(resid) <= bound))
    print("KERNEL_OK")
</pallas_src>

<mosaic_0001>
module attributes {stable_mosaic.version = 11 : i64} {
  func.func @_noiser_kernel(%arg0: i32, %arg1: memref<1xi32, #tpu.memory_space<smem>>, %arg2: memref<2xf32, #tpu.memory_space<smem>>, %arg3: memref<4x512xf32, #tpu.memory_space<vmem>>, %arg4: memref<4x512xf32, #tpu.memory_space<vmem>>) attributes {dimension_semantics = [#tpu.dimension_semantics<parallel>], iteration_bounds = array<i64: 1>, scalar_prefetch = 0 : i64, scratch_operands = 0 : i64, tpu.core_type = #tpu.core_type<tc>, window_params = [{transform_indices = @transform_0, window_bounds = array<i64: 1>}, {transform_indices = @transform_1, window_bounds = array<i64: 2>}, {transform_indices = @transform_2, window_bounds = array<i64: 4, 512>}, {transform_indices = @transform_3, window_bounds = array<i64: 4, 512>}]} {
    %0 = tpu.iota {dimensions = array<i32: 0>} : vector<4x512xi32>
    %1 = tpu.iota {dimensions = array<i32: 1>} : vector<4x512xi32>
    %c4_i32 = arith.constant 4 : i32
    %2 = arith.muli %arg0, %c4_i32 : i32
    %3 = vector.broadcast %2 : i32 to vector<4x512xi32>
    %4 = arith.addi %3, %0 : vector<4x512xi32>
    %c512_i32 = arith.constant 512 : i32
    %5 = vector.broadcast %c512_i32 : i32 to vector<4x512xi32>
    %6 = arith.muli %4, %5 : vector<4x512xi32>
    %7 = arith.addi %6, %1 : vector<4x512xi32>
    %c0 = arith.constant 0 : index
    %8 = memref.load %arg1[%c0] : memref<1xi32, #tpu.memory_space<smem>>
    %c-1640531535_i32 = arith.constant -1640531535 : i32
    %9 = arith.muli %8, %c-1640531535_i32 : i32
    %10 = vector.broadcast %9 : i32 to vector<4x512xi32>
    %11 = arith.addi %7, %10 : vector<4x512xi32>
    %c-2048144789_i32 = arith.constant -2048144789 : i32
    %12 = vector.broadcast %c-2048144789_i32 : i32 to vector<4x512xi32>
    %13 = arith.addi %11, %12 : vector<4x512xi32>
    %c16_i32 = arith.constant 16 : i32
    %14 = vector.broadcast %c16_i32 : i32 to vector<4x512xi32>
    %15 = arith.shrui %13, %14 : vector<4x512xi32>
    %16 = arith.xori %13, %15 : vector<4x512xi32>
    %c-2048144789_i32_0 = arith.constant -2048144789 : i32
    %17 = vector.broadcast %c-2048144789_i32_0 : i32 to vector<4x512xi32>
    %18 = arith.muli %16, %17 : vector<4x512xi32>
    %c13_i32 = arith.constant 13 : i32
    %19 = vector.broadcast %c13_i32 : i32 to vector<4x512xi32>
    %20 = arith.shrui %18, %19 : vector<4x512xi32>
    %21 = arith.xori %18, %20 : vector<4x512xi32>
    %c-1028477387_i32 = arith.constant -1028477387 : i32
    %22 = vector.broadcast %c-1028477387_i32 : i32 to vector<4x512xi32>
    %23 = arith.muli %21, %22 : vector<4x512xi32>
    %c16_i32_1 = arith.constant 16 : i32
    %24 = vector.broadcast %c16_i32_1 : i32 to vector<4x512xi32>
    %25 = arith.shrui %23, %24 : vector<4x512xi32>
    %26 = arith.xori %23, %25 : vector<4x512xi32>
    %c8_i32 = arith.constant 8 : i32
    %27 = vector.broadcast %c8_i32 : i32 to vector<4x512xi32>
    %28 = arith.shrui %26, %27 : vector<4x512xi32>
    %29 = arith.sitofp %28 : vector<4x512xi32> to vector<4x512xf32>
    %cst = arith.constant 5.000000e-01 : f32
    %30 = vector.broadcast %cst : f32 to vector<4x512xf32>
    %31 = arith.addf %29, %30 : vector<4x512xf32>
    %cst_2 = arith.constant 5.96046448E-8 : f32
    %32 = vector.broadcast %cst_2 : f32 to vector<4x512xf32>
    %33 = arith.mulf %31, %32 : vector<4x512xf32>
    %cst_3 = arith.constant 2.000000e+00 : f32
    %34 = vector.broadcast %cst_3 : f32 to vector<4x512xf32>
    %35 = arith.mulf %34, %33 : vector<4x512xf32>
    %cst_4 = arith.constant 1.000000e+00 : f32
    %36 = vector.broadcast %cst_4 : f32 to vector<4x512xf32>
    %37 = arith.subf %35, %36 : vector<4x512xf32>
    %cst_5 = arith.constant 1.000000e+00 : f32
    %38 = vector.broadcast %cst_5 : f32 to vector<4x512xf32>
    %39 = arith.subf %38, %37 : vector<4x512xf32>
    %cst_6 = arith.constant 1.000000e+00 : f32
    %40 = vector.broadcast %cst_6 : f32 to vector<4x512xf32>
    %41 = arith.addf %40, %37 : vector<4x512xf32>
    %42 = arith.mulf %39, %41 : vector<4x512xf32>
    %43 = math.log %42 : vector<4x512xf32>
    %cst_7 = arith.constant 0.000000e+00 : f32
    %44 = vector.broadcast %cst_7 : f32 to vector<4x512xf32>
    %45 = arith.subf %44, %43 : vector<4x512xf32>
    %cst_8 = arith.constant 2.500000e+00 : f32
    %46 = vector.broadcast %cst_8 : f32 to vector<4x512xf32>
    %47 = arith.subf %45, %46 : vector<4x512xf32>
    %48 = math.sqrt %45 : vector<4x512xf32>
    %cst_9 = arith.constant 3.000000e+00 : f32
    %49 = vector.broadcast %cst_9 : f32 to vector<4x512xf32>
    %50 = arith.subf %48, %49 : vector<4x512xf32>
    %cst_10 = arith.constant 2.81022636E-8 : f32
    %51 = vector.broadcast %cst_10 : f32 to vector<4x512xf32>
    %52 = arith.mulf %51, %47 : vector<4x512xf32>
    %cst_11 = arith.constant 3.43273939E-7 : f32
    %53 = vector.broadcast %cst_11 : f32 to vector<4x512xf32>
    %54 = arith.addf %52, %53 : vector<4x512xf32>
    %55 = arith.mulf %54, %47 : vector<4x512xf32>
    %cst_12 = arith.constant -3.5233877E-6 : f32
    %56 = vector.broadcast %cst_12 : f32 to vector<4x512xf32>
    %57 = arith.addf %55, %56 : vector<4x512xf32>
    %58 = arith.mulf %57, %47 : vector<4x512xf32>
    %cst_13 = arith.constant -4.39150654E-6 : f32
    %59 = vector.broadcast %cst_13 : f32 to vector<4x512xf32>
    %60 = arith.addf %58, %59 : vector<4x512xf32>
    %61 = arith.mulf %60, %47 : vector<4x512xf32>
    %cst_14 = arith.constant 2.1858087E-4 : f32
    %62 = vector.broadcast %cst_14 : f32 to vector<4x512xf32>
    %63 = arith.addf %61, %62 : vector<4x512xf32>
    %64 = arith.mulf %63, %47 : vector<4x512xf32>
    %cst_15 = arith.constant -0.00125372503 : f32
    %65 = vector.broadcast %cst_15 : f32 to vector<4x512xf32>
    %66 = arith.addf %64, %65 : vector<4x512xf32>
    %67 = arith.mulf %66, %47 : vector<4x512xf32>
    %cst_16 = arith.constant -0.00417768164 : f32
    %68 = vector.broadcast %cst_16 : f32 to vector<4x512xf32>
    %69 = arith.addf %67, %68 : vector<4x512xf32>
    %70 = arith.mulf %69, %47 : vector<4x512xf32>
    %cst_17 = arith.constant 0.246640727 : f32
    %71 = vector.broadcast %cst_17 : f32 to vector<4x512xf32>
    %72 = arith.addf %70, %71 : vector<4x512xf32>
    %73 = arith.mulf %72, %47 : vector<4x512xf32>
    %cst_18 = arith.constant 1.50140941 : f32
    %74 = vector.broadcast %cst_18 : f32 to vector<4x512xf32>
    %75 = arith.addf %73, %74 : vector<4x512xf32>
    %cst_19 = arith.constant -2.00214257E-4 : f32
    %76 = vector.broadcast %cst_19 : f32 to vector<4x512xf32>
    %77 = arith.mulf %76, %50 : vector<4x512xf32>
    %cst_20 = arith.constant 1.00950558E-4 : f32
    %78 = vector.broadcast %cst_20 : f32 to vector<4x512xf32>
    %79 = arith.addf %77, %78 : vector<4x512xf32>
    %80 = arith.mulf %79, %50 : vector<4x512xf32>
    %cst_21 = arith.constant 0.00134934322 : f32
    %81 = vector.broadcast %cst_21 : f32 to vector<4x512xf32>
    %82 = arith.addf %80, %81 : vector<4x512xf32>
    %83 = arith.mulf %82, %50 : vector<4x512xf32>
    %cst_22 = arith.constant -0.00367342844 : f32
    %84 = vector.broadcast %cst_22 : f32 to vector<4x512xf32>
    %85 = arith.addf %83, %84 : vector<4x512xf32>
    %86 = arith.mulf %85, %50 : vector<4x512xf32>
    %cst_23 = arith.constant 0.00573950773 : f32
    %87 = vector.broadcast %cst_23 : f32 to vector<4x512xf32>
    %88 = arith.addf %86, %87 : vector<4x512xf32>
    %89 = arith.mulf %88, %50 : vector<4x512xf32>
    %cst_24 = arith.constant -0.0076224613 : f32
    %90 = vector.broadcast %cst_24 : f32 to vector<4x512xf32>
    %91 = arith.addf %89, %90 : vector<4x512xf32>
    %92 = arith.mulf %91, %50 : vector<4x512xf32>
    %cst_25 = arith.constant 0.00943887047 : f32
    %93 = vector.broadcast %cst_25 : f32 to vector<4x512xf32>
    %94 = arith.addf %92, %93 : vector<4x512xf32>
    %95 = arith.mulf %94, %50 : vector<4x512xf32>
    %cst_26 = arith.constant 1.00167406 : f32
    %96 = vector.broadcast %cst_26 : f32 to vector<4x512xf32>
    %97 = arith.addf %95, %96 : vector<4x512xf32>
    %98 = arith.mulf %97, %50 : vector<4x512xf32>
    %cst_27 = arith.constant 2.83297682 : f32
    %99 = vector.broadcast %cst_27 : f32 to vector<4x512xf32>
    %100 = arith.addf %98, %99 : vector<4x512xf32>
    %cst_28 = arith.constant 5.000000e+00 : f32
    %101 = vector.broadcast %cst_28 : f32 to vector<4x512xf32>
    %102 = arith.cmpf olt, %45, %101 : vector<4x512xf32>
    %103 = arith.select %102, %75, %100 : vector<4x512xi1>, vector<4x512xf32>
    %104 = arith.mulf %103, %37 : vector<4x512xf32>
    %c0_29 = arith.constant 0 : index
    %105 = memref.load %arg2[%c0_29] : memref<2xf32, #tpu.memory_space<smem>>
    %c1 = arith.constant 1 : index
    %106 = memref.load %arg2[%c1] : memref<2xf32, #tpu.memory_space<smem>>
    %c0_30 = arith.constant 0 : index
    %c0_31 = arith.constant 0 : index
    %107 = vector.load %arg3[%c0_30, %c0_31] : memref<4x512xf32, #tpu.memory_space<vmem>>, vector<4x512xf32>
    %108 = vector.broadcast %105 : f32 to vector<4x512xf32>
    %109 = arith.mulf %104, %108 : vector<4x512xf32>
    %110 = arith.addf %107, %109 : vector<4x512xf32>
    %111 = vector.broadcast %106 : f32 to vector<4x512xf32>
    %112 = arith.addf %110, %111 : vector<4x512xf32>
    %c0_32 = arith.constant 0 : index
    %c0_33 = arith.constant 0 : index
    %113 = vector.load %arg4[%c0_32, %c0_33] : memref<4x512xf32, #tpu.memory_space<vmem>>, vector<4x512xf32>
    tpu.vector_store %arg4[%c0_32, %c0_33], %112 {strides = array<i32>} : memref<4x512xf32, #tpu.memory_space<vmem>>, vector<4x512xf32>,
    return
  }
  func.func @transform_0(%arg0: i32) -> i32 {
    %c0_i32 = arith.constant 0 : i32
    %c0_i32_0 = arith.constant 0 : i32
    return %c0_i32 : i32
  }
  func.func @transform_1(%arg0: i32) -> i32 {
    %c0_i32 = arith.constant 0 : i32
    %c0_i32_0 = arith.constant 0 : i32
    return %c0_i32 : i32
  }
  func.func @transform_2(%arg0: i32) -> (i32, i32) {
    %c0_i32 = arith.constant 0 : i32
    %c0_i32_0 = arith.constant 0 : i32
    return %arg0, %c0_i32 : i32, i32
  }
  func.func @transform_3(%arg0: i32) -> (i32, i32) {
    %c0_i32 = arith.constant 0 : i32
    %c0_i32_0 = arith.constant 0 : i32
    return %arg0, %c0_i32 : i32, i32
  }
}

</mosaic_0001>

<bundles_post_ra>
// kernel: tpu_custom_call.1
= control target key start
LH: loop header
LB: loop body
LE: loop exit
PB: predicated region body
PF: predicated region fallthrough
CT: control target
= control target key end

     0   :  { %9 = vsyncpa [#allocation6], 0  ;;  %s673_s0 = inlined_call_operand.<no memory space> [shape: s32[1], index: 0, kind: input, shape index: {}]   ;;  %s674_s1 = inlined_call_operand.vmem [shape: f32[2], index: 1, kind: input, shape index: {}]   ;;  %s675_s2 = inlined_call_operand.hbm [shape: f32[4,512], index: 2, kind: input, shape index: {}]   ;;  %s676_s3 = inlined_call_operand.hbm [shape: f32[4,512], index: 3, kind: output, shape index: {}]  }
   0x1   :  { %10 = vsyncpa [#allocation4], 0 }
   0x2   :  { %11 = vsyncpa [#allocation5], 0  ;;  %s20_s14 = sshll.u32 %s674_s1, 4  ;;  %s21_s14 = int_to_ptr.vmem [resolvable:$true] %s20_s14 }
   0x3   :  { %s395_s15 = scalar_lea.vmem %s21_s14, 16  ;;  %p400_p1 = scmp.lt.s32.totalorder %s21_s14, %s21_s14 }
   0x4   :  { %p396_p0 = scmp.ne.s32.totalorder %s21_s14, %s395_s15  ;;  %p401_p2 = scmp.lt.s32.totalorder %s395_s15, %s395_s15 }
   0x6   :  { %p402_p3 = por %p401_p2, %p400_p1 }
   0x8   :  { %p403_p4 = pnand %p402_p3, %p396_p0 }
   0xa   :  { %406 = shalt.err (!%p403_p4)
}
   0xb   :  { %s457_s16 = smov [#allocation3]   ;;  %s458_s17 = smov [#allocation7]  }
   0xc   :  { %23 = dma.vmem_to_smem %s21_s14, 16, %s457_s16, [#allocation6]  }
   0xd   :  { %s30_s18 = sshll.u32 %s458_s17, 4  ;;  %s407_s21 = scalar_lea.hbm %s675_s2, 256  ;;  %s31_s18 = int_to_ptr.vmem [resolvable:$true] %s30_s18 }
   0xe   :  { %p408_p5 = scmp.ne.s32.totalorder %s675_s2, %s407_s21  ;;  %p411_p6 = scmp.lt.u32.totalorder %s407_s21, %s675_s2 }
  0x10   :  { %p413_p7 = pnand %p411_p6, %p408_p5 }
  0x12   :  { %416 = shalt.err (!%p413_p7)
}
  0x13   :  { %s417_s25 = scalar_lea.vmem %s31_s18, 256  ;;  %p422_p9 = scmp.lt.s32.totalorder %s31_s18, %s31_s18 }
  0x14   :  { %p418_p8 = scmp.ne.s32.totalorder %s31_s18, %s417_s25  ;;  %p423_p10 = scmp.lt.s32.totalorder %s417_s25, %s417_s25 }
  0x16   :  { %p424_p11 = por %p423_p10, %p422_p9 }
  0x18   :  { %p425_p12 = pnand %p424_p11, %p418_p8 }
  0x1a   :  { %428 = shalt.err (!%p425_p12)
}
  0x1b   :  { %33 = dma.hbm_to_vmem [thread:$0]  %s675_s2, 256, %s31_s18, [#allocation4]  }
  0x1c   :  { %451 = dma.done.wait [#allocation6], 16  }
  0x1d   :  { %452 = vsyncadd [#allocation6], 4294967280 }
  0x1e   :  { %453 = dma.done.wait [#allocation4], 256  }
  0x1f   :  { %454 = vsyncadd [#allocation4], 4294967040 }
  0x20   :  { %40 = sfence }
  0x21   :  { %v41_v0 = vlaneseq  ;;  %s57_s30 = smul.u32 2654435761, %s673_s0  ;;  %s323_s0 = sld [smem:[#allocation3]] }
  0x22   :  { %s647_s2 = sld [smem:[#allocation3 + $0x1]]  ;;  %s459_s4 = smov [#allocation8]  }
  0x23   :  { %v42_v1 = vshrl.u32 %v41_v0, 7  ;;  %v44_v2 = vand.u32 127, %v41_v0  ;;  %v58_v7 = vstv %s57_s30  ;;  %s353_s5 = sshll.u32 %s459_s4, 4  ;;  %s354_s5 = int_to_ptr.vmem [resolvable:$true] %s353_s5 }
  0x24   :  { %s429_s6 = scalar_lea.vmem %s354_s5, 256  ;;  %p434_p0 = scmp.lt.s32.totalorder %s354_s5, %s354_s5 }
  0x25   :  { %v45_v3 = vadd.s32 128, %v44_v2  ;;  %v46_v4 = vadd.s32 256, %v44_v2  ;;  %v47_v5 = vadd.s32 384, %v44_v2  ;;  %v51_v6 = vmul.u32 512, %v42_v1  ;;  %p430_p13 = scmp.ne.s32.totalorder %s354_s5, %s429_s6  ;;  %p435_p1 = scmp.lt.s32.totalorder %s429_s6, %s429_s6 }
  0x27   :  { %v52_v8 = vadd.s32 %v51_v6, %v44_v2  ;;  %v53_v9 = vadd.s32 %v51_v6, %v45_v3  ;;  %v54_v10 = vadd.s32 %v51_v6, %v46_v4  ;;  %v55_v11 = vadd.s32 %v51_v6, %v47_v5  ;;  %p436_p2 = por %p435_p1, %p434_p0 }
  0x29   :  { %v59_v12 = vadd.s32 %v58_v7, %v52_v8  ;;  %v60_v13 = vadd.s32 %v58_v7, %v53_v9  ;;  %v61_v14 = vadd.s32 %v58_v7, %v54_v10  ;;  %v62_v15 = vadd.s32 %v58_v7, %v55_v11  ;;  %p437_p3 = pnand %p436_p2, %p430_p13 }
  0x2b   :  { %v63_v16 = vadd.s32 2246822507, %v59_v12  ;;  %v64_v17 = vadd.s32 2246822507, %v60_v13  ;;  %v65_v18 = vadd.s32 2246822507, %v61_v14 }
  0x2c   :  { %v66_v19 = vadd.s32 2246822507, %v62_v15 }
  0x2d   :  { %v67_v20 = vshrl.u32 %v63_v16, 16  ;;  %v68_v21 = vshrl.u32 %v64_v17, 16  ;;  %v69_v22 = vshrl.u32 %v65_v18, 16 }
  0x2e   :  { %v70_v23 = vshrl.u32 %v66_v19, 16 }
  0x2f   :  { %v71_v24 = vxor.u32 %v67_v20, %v63_v16  ;;  %v72_v25 = vxor.u32 %v68_v21, %v64_v17  ;;  %v73_v26 = vxor.u32 %v69_v22, %v65_v18 }
  0x30   :  { %v74_v27 = vxor.u32 %v70_v23, %v66_v19 }
  0x31   :  { %v75_v28 = vmul.u32 2246822507, %v71_v24  ;;  %v76_v29 = vmul.u32 2246822507, %v72_v25 }
  0x32   :  { %v77_v30 = vmul.u32 2246822507, %v73_v26  ;;  %v78_v31 = vmul.u32 2246822507, %v74_v27 }
  0x33   :  { %v79_v32 = vshrl.u32 %v75_v28, 13  ;;  %v80_v33 = vshrl.u32 %v76_v29, 13 }
  0x34   :  { %v81_v34 = vshrl.u32 %v77_v30, 13  ;;  %v82_v35 = vshrl.u32 %v78_v31, 13 }
  0x35   :  { %v83_v36 = vxor.u32 %v79_v32, %v75_v28  ;;  %v84_v37 = vxor.u32 %v80_v33, %v76_v29 }
  0x36   :  { %v85_v38 = vxor.u32 %v81_v34, %v77_v30  ;;  %v86_v39 = vxor.u32 %v82_v35, %v78_v31 }
  0x37   :  { %v87_v40 = vmul.u32 3266489909, %v83_v36  ;;  %v88_v41 = vmul.u32 3266489909, %v84_v37 }
  0x38   :  { %v89_v42 = vmul.u32 3266489909, %v85_v38  ;;  %v90_v43 = vmul.u32 3266489909, %v86_v39 }
  0x39   :  { %v91_v44 = vshrl.u32 %v87_v40, 16  ;;  %v92_v45 = vshrl.u32 %v88_v41, 16 }
  0x3a   :  { %v93_v46 = vshrl.u32 %v89_v42, 16  ;;  %v94_v47 = vshrl.u32 %v90_v43, 16 }
  0x3b   :  { %v95_v48 = vxor.u32 %v91_v44, %v87_v40  ;;  %v96_v49 = vxor.u32 %v92_v45, %v88_v41 }
  0x3c   :  { %v97_v50 = vxor.u32 %v93_v46, %v89_v42  ;;  %v98_v51 = vxor.u32 %v94_v47, %v90_v43 }
  0x3d   :  { %v99_v52 = vshrl.u32 %v95_v48, 8  ;;  %v100_v53 = vshrl.u32 %v96_v49, 8 }
  0x3e   :  { %v101_v54 = vshrl.u32 %v97_v50, 8  ;;  %v102_v55 = vshrl.u32 %v98_v51, 8 }
  0x3f   :  { %v103_v56 = vcvt.s32.f32 %v99_v52  ;;  %v104_v57 = vcvt.s32.f32 %v100_v53 }
  0x40   :  { %v105_v58 = vcvt.s32.f32 %v101_v54  ;;  %v106_v59 = vcvt.s32.f32 %v102_v55 }
  0x41   :  { %v107_v60 = vadd.f32 0.5, %v103_v56  ;;  %v108_v61 = vadd.f32 0.5, %v104_v57 }
  0x42   :  { %v109_v62 = vadd.f32 0.5, %v105_v58  ;;  %v110_v63 = vadd.f32 0.5, %v106_v59 }
  0x43   :  { %v111_v0 = vmul.f32 5.9604645e-08, %v107_v60  ;;  %v112_v1 = vmul.f32 5.9604645e-08, %v108_v61 }
  0x44   :  { %v113_v2 = vmul.f32 5.9604645e-08, %v109_v62  ;;  %v114_v3 = vmul.f32 5.9604645e-08, %v110_v63 }
  0x45   :  { %v115_v4 = vmul.f32 2.0, %v111_v0  ;;  %v116_v5 = vmul.f32 2.0, %v112_v1 }
  0x46   :  { %v117_v6 = vmul.f32 2.0, %v113_v2  ;;  %v118_v7 = vmul.f32 2.0, %v114_v3 }
  0x47   :  { %v498_v8 = vadd.f32 -1.0, %v115_v4  ;;  %v500_v9 = vadd.f32 -1.0, %v116_v5 }
  0x48   :  { %v502_v10 = vadd.f32 -1.0, %v117_v6  ;;  %v504_v11 = vadd.f32 -1.0, %v118_v7 }
  0x49   :  { %v123_v12 = vsub.f32 1.0, %v498_v8  ;;  %v124_v13 = vsub.f32 1.0, %v500_v9  ;;  %v127_v14 = vadd.f32 1.0, %v498_v8  ;;  %v128_v15 = vadd.f32 1.0, %v500_v9 }
  0x4a   :  { %v125_v16 = vsub.f32 1.0, %v502_v10  ;;  %v126_v17 = vsub.f32 1.0, %v504_v11  ;;  %v129_v18 = vadd.f32 1.0, %v502_v10  ;;  %v130_v19 = vadd.f32 1.0, %v504_v11 }
  0x4b   :  { %v131_v20 = vmul.f32 %v127_v14, %v123_v12  ;;  %v132_v21 = vmul.f32 %v128_v15, %v124_v13 }
  0x4c   :  { %v133_v22 = vmul.f32 %v129_v18, %v125_v16  ;;  %v134_v23 = vmul.f32 %v130_v19, %v126_v17 }
  0x4d   :  { %379 = vlog2.f32 %v131_v20 }
  0x4e   :  { %381 = vlog2.f32 %v132_v21 }
  0x4f   :  { %383 = vlog2.f32 %v133_v22 }
  0x50   :  { %385 = vlog2.f32 %v134_v23 }
  0x57   :  { %v380_v24 = vpop.eup %379 }
  0x58   :  { %v382_v25 = vpop.eup %381  ;;  %v136_v26 = vmul.f32 0.6931472, %v380_v24 }
  0x59   :  { %v384_v27 = vpop.eup %383  ;;  %v138_v28 = vmul.f32 0.6931472, %v382_v25 }
  0x5a   :  { %v386_v29 = vpop.eup %385  ;;  %v140_v30 = vmul.f32 0.6931472, %v384_v27  ;;  %v514_v31 = vsub.f32 0.0, %v136_v26 }
  0x5b   :  { %v142_v32 = vmul.f32 0.6931472, %v386_v29  ;;  %v516_v33 = vsub.f32 0.0, %v138_v28 }
  0x5c   :  { %v518_v34 = vsub.f32 0.0, %v140_v30  ;;  %387 = vrsqrt.f32 %v514_v31  ;;  %v524_v36 = vadd.f32 -2.5, %v514_v31  ;;  %vm153_vm0 = vcmp.eq.f32.partialorder %v514_v31, inf }
  0x5d   :  { %v521_v35 = vsub.f32 0.0, %v142_v32  ;;  %v527_v37 = vadd.f32 -2.5, %v516_v33  ;;  %389 = vrsqrt.f32 %v516_v33  ;;  %vm155_vm1 = vcmp.eq.f32.partialorder %v514_v31, 0.0 }
  0x5e   :  { %v530_v38 = vadd.f32 -2.5, %v518_v34  ;;  %391 = vrsqrt.f32 %v518_v34  ;;  %v183_v40 = vmul.f32 2.8102264e-08, %v524_v36  ;;  %v156_v44 = vand.u32 2147483648, %v514_v31 }
  0x5f   :  { %v534_v39 = vadd.f32 -2.5, %v521_v35  ;;  %393 = vrsqrt.f32 %v521_v35  ;;  %v184_v41 = vmul.f32 2.8102264e-08, %v527_v37  ;;  %vm160_vm2 = vcmp.eq.f32.partialorder %v516_v33, inf }
  0x60   :  { %v185_v42 = vmul.f32 2.8102264e-08, %v530_v38  ;;  %v187_v45 = vadd.f32 3.4327394e-07, %v183_v40  ;;  %vm162_vm3 = vcmp.eq.f32.partialorder %v516_v33, 0.0  ;;  %v163_v49 = vand.u32 2147483648, %v516_v33 }
  0x61   :  { %v186_v43 = vmul.f32 2.8102264e-08, %v534_v39  ;;  %v188_v46 = vadd.f32 3.4327394e-07, %v184_v41  ;;  %vm167_vm4 = vcmp.eq.f32.partialorder %v518_v34, inf  ;;  %vm169_vm5 = vcmp.eq.f32.partialorder %v518_v34, 0.0 }
  0x62   :  { %v189_v47 = vadd.f32 3.4327394e-07, %v185_v42  ;;  %v191_v50 = vmul.f32 %v524_v36, %v187_v45  ;;  %v170_v53 = vand.u32 2147483648, %v518_v34  ;;  %vm174_vm6 = vcmp.eq.f32.partialorder %v521_v35, inf }
  0x63   :  { %v190_v48 = vadd.f32 3.4327394e-07, %v186_v43  ;;  %v192_v51 = vmul.f32 %v527_v37, %v188_v46  ;;  %vm176_vm7 = vcmp.eq.f32.partialorder %v521_v35, 0.0  ;;  %v177_v60 = vand.u32 2147483648, %v521_v35 }
  0x64   :  { %v193_v54 = vmul.f32 %v530_v38, %v189_v47  ;;  %v195_v57 = vadd.f32 -3.5233877e-06, %v191_v50  ;;  %vm311_vm8 = vcmp.lt.f32.partialorder %v514_v31, 5.0  ;;  %vm312_vm9 = vcmp.lt.f32.partialorder %v516_v33, 5.0 }
  0x65   :  { %v194_v55 = vmul.f32 %v534_v39, %v190_v48  ;;  %v196_v58 = vadd.f32 -3.5233877e-06, %v192_v51  ;;  %vm313_vm10 = vcmp.lt.f32.partialorder %v518_v34, 5.0  ;;  %vm314_vm11 = vcmp.lt.f32.partialorder %v521_v35, 5.0 }
  0x66   :  { %v388_v52 = vpop.eup %387  ;;  %v197_v61 = vadd.f32 -3.5233877e-06, %v193_v54  ;;  %v199_v2 = vmul.f32 %v524_v36, %v195_v57 }
  0x67   :  { %v152_v56 = vmul.f32 %v388_v52, %v514_v31  ;;  %v390_v59 = vpop.eup %389  ;;  %v198_v62 = vadd.f32 -3.5233877e-06, %v194_v55  ;;  %v200_v3 = vmul.f32 %v527_v37, %v196_v58 }
  0x68   :  { %v392_v63 = vpop.eup %391  ;;  %v159_v1 = vmul.f32 %v390_v59, %v516_v33  ;;  %v201_v7 = vmul.f32 %v530_v38, %v197_v61  ;;  %v203_v16 = vadd.f32 -4.3915065e-06, %v199_v2 }
  0x69   :  { %v154_v0 = vsel %vm153_vm0, %v514_v31, %v152_v56  ;;  %v394_v4 = vpop.eup %393  ;;  %v166_v6 = vmul.f32 %v392_v63, %v518_v34  ;;  %v202_v12 = vmul.f32 %v534_v39, %v198_v62  ;;  %v204_v19 = vadd.f32 -4.3915065e-06, %v200_v3  ;;  %v325_v31 = vld [vmem:[#allocation7] sm:$0xff] }
  0x6a   :  { %v157_v5 = vsel %vm155_vm1, %v156_v44, %v154_v0  ;;  %v161_v13 = vsel %vm160_vm2, %v516_v33, %v159_v1  ;;  %v173_v14 = vmul.f32 %v394_v4, %v521_v35  ;;  %v205_v20 = vadd.f32 -4.3915065e-06, %v201_v7 }
  0x6b   :  { %v574_v15 = vadd.f32 -3.0, %v157_v5  ;;  %v164_v17 = vsel %vm162_vm3, %v163_v49, %v161_v13  ;;  %v168_v18 = vsel %vm167_vm4, %v518_v34, %v166_v6  ;;  %v206_v24 = vadd.f32 -4.3915065e-06, %v202_v12 }
  0x6c   :  { %v171_v21 = vsel %vm169_vm5, %v170_v53, %v168_v18  ;;  %v175_v22 = vsel %vm174_vm6, %v521_v35, %v173_v14  ;;  %v586_v23 = vadd.f32 -3.0, %v164_v17  ;;  %v207_v27 = vmul.f32 %v524_v36, %v203_v16 }
  0x6d   :  { %v178_v25 = vsel %vm176_vm7, %v177_v60, %v175_v22  ;;  %v590_v26 = vadd.f32 -3.0, %v171_v21  ;;  %v208_v28 = vmul.f32 %v527_v37, %v204_v19  ;;  %v209_v30 = vmul.f32 %v530_v38, %v205_v20 }
  0x6e   :  { %v594_v29 = vadd.f32 -3.0, %v178_v25  ;;  %v210_v32 = vmul.f32 %v534_v39, %v206_v24  ;;  %v247_v40 = vmul.f32 -0.00020021426, %v574_v15  ;;  %v211_v41 = vadd.f32 0.00021858087, %v207_v27 }
  0x6f   :  { %v212_v42 = vadd.f32 0.00021858087, %v208_v28  ;;  %v248_v43 = vmul.f32 -0.00020021426, %v586_v23  ;;  %v213_v44 = vadd.f32 0.00021858087, %v209_v30 }
  0x70   :  { %v214_v45 = vadd.f32 0.00021858087, %v210_v32  ;;  %v249_v46 = vmul.f32 -0.00020021426, %v590_v26  ;;  %v215_v47 = vmul.f32 %v524_v36, %v211_v41  ;;  %v250_v49 = vmul.f32 -0.00020021426, %v594_v29 }
  0x71   :  { %v216_v48 = vmul.f32 %v527_v37, %v212_v42  ;;  %v251_v50 = vadd.f32 0.00010095056, %v247_v40  ;;  %v217_v51 = vmul.f32 %v530_v38, %v213_v44  ;;  %v252_v53 = vadd.f32 0.00010095056, %v248_v43 }
  0x72   :  { %v218_v52 = vmul.f32 %v534_v39, %v214_v45  ;;  %v253_v54 = vadd.f32 0.00010095056, %v249_v46  ;;  %v219_v55 = vadd.f32 -0.001253725, %v215_v47  ;;  %v254_v56 = vadd.f32 0.00010095056, %v250_v49 }
  0x73   :  { %v255_v57 = vmul.f32 %v574_v15, %v251_v50  ;;  %v220_v58 = vadd.f32 -0.001253725, %v216_v48  ;;  %v221_v59 = vadd.f32 -0.001253725, %v217_v51  ;;  %v256_v60 = vmul.f32 %v586_v23, %v252_v53 }
  0x74   :  { %v257_v61 = vmul.f32 %v590_v26, %v253_v54  ;;  %v222_v62 = vadd.f32 -0.001253725, %v218_v52  ;;  %v258_v63 = vmul.f32 %v594_v29, %v254_v56  ;;  %v223_v3 = vmul.f32 %v524_v36, %v219_v55 }
  0x75   :  { %v259_v0 = vadd.f32 0.0013493432, %v255_v57  ;;  %v260_v1 = vadd.f32 0.0013493432, %v256_v60  ;;  %v224_v6 = vmul.f32 %v527_v37, %v220_v58  ;;  %v225_v7 = vmul.f32 %v530_v38, %v221_v59 }
  0x76   :  { %v261_v2 = vadd.f32 0.0013493432, %v257_v61  ;;  %v262_v4 = vadd.f32 0.0013493432, %v258_v63  ;;  %v226_v14 = vmul.f32 %v534_v39, %v222_v62  ;;  %v227_v20 = vadd.f32 -0.0041776816, %v223_v3 }
  0x77   :  { %v263_v5 = vmul.f32 %v574_v15, %v259_v0  ;;  %v264_v12 = vmul.f32 %v586_v23, %v260_v1  ;;  %v228_v24 = vadd.f32 -0.0041776816, %v224_v6  ;;  %v229_v25 = vadd.f32 -0.0041776816, %v225_v7 }
  0x78   :  { %v265_v13 = vmul.f32 %v590_v26, %v261_v2  ;;  %v266_v16 = vmul.f32 %v594_v29, %v262_v4  ;;  %v230_v30 = vadd.f32 -0.0041776816, %v226_v14  ;;  %v231_v43 = vmul.f32 %v524_v36, %v227_v20 }
  0x79   :  { %v267_v17 = vadd.f32 -0.0036734284, %v263_v5  ;;  %v268_v18 = vadd.f32 -0.0036734284, %v264_v12  ;;  %v232_v46 = vmul.f32 %v527_v37, %v228_v24  ;;  %v233_v47 = vmul.f32 %v530_v38, %v229_v25 }
  0x7a   :  { %v269_v19 = vadd.f32 -0.0036734284, %v265_v13  ;;  %v270_v21 = vadd.f32 -0.0036734284, %v266_v16  ;;  %v234_v50 = vmul.f32 %v534_v39, %v230_v30  ;;  %v235_v55 = vadd.f32 0.24664073, %v231_v43 }
  0x7b   :  { %v271_v22 = vmul.f32 %v574_v15, %v267_v17  ;;  %v272_v27 = vmul.f32 %v586_v23, %v268_v18  ;;  %v236_v58 = vadd.f32 0.24664073, %v232_v46  ;;  %v237_v59 = vadd.f32 0.24664073, %v233_v47  ;;  %v326_v47 = vld [vmem:[#allocation7 + $0x8] sm:$0xff] }
  0x7c   :  { %v273_v28 = vmul.f32 %v590_v26, %v269_v19  ;;  %v274_v32 = vmul.f32 %v594_v29, %v270_v21  ;;  %v238_v62 = vadd.f32 0.24664073, %v234_v50  ;;  %v239_v3 = vmul.f32 %v524_v36, %v235_v55 }
  0x7d   :  { %v275_v40 = vadd.f32 0.0057395077, %v271_v22  ;;  %v276_v41 = vadd.f32 0.0057395077, %v272_v27  ;;  %v240_v6 = vmul.f32 %v527_v37, %v236_v58  ;;  %v241_v7 = vmul.f32 %v530_v38, %v237_v59 }
  0x7e   :  { %v277_v42 = vadd.f32 0.0057395077, %v273_v28  ;;  %v278_v44 = vadd.f32 0.0057395077, %v274_v32  ;;  %v242_v14 = vmul.f32 %v534_v39, %v238_v62  ;;  %v243_v36 = vadd.f32 1.5014094, %v239_v3 }
  0x7f   :  { %v279_v45 = vmul.f32 %v574_v15, %v275_v40  ;;  %v280_v48 = vmul.f32 %v586_v23, %v276_v41  ;;  %v244_v37 = vadd.f32 1.5014094, %v240_v6  ;;  %v245_v38 = vadd.f32 1.5014094, %v241_v7 }
  0x80   :  { %v281_v49 = vmul.f32 %v590_v26, %v277_v42  ;;  %v282_v51 = vmul.f32 %v594_v29, %v278_v44  ;;  %v246_v39 = vadd.f32 1.5014094, %v242_v14  ;;  %v327_v40 = vstv %s323_s0 }
  0x81   :  { %v283_v52 = vadd.f32 -0.0076224613, %v279_v45  ;;  %v284_v53 = vadd.f32 -0.0076224613, %v280_v48 }
  0x82   :  { %v285_v54 = vadd.f32 -0.0076224613, %v281_v49  ;;  %v286_v56 = vadd.f32 -0.0076224613, %v282_v51  ;;  %v342_v49 = vstv %s647_s2 }
  0x83   :  { %v287_v57 = vmul.f32 %v574_v15, %v283_v52  ;;  %v288_v60 = vmul.f32 %v586_v23, %v284_v53 }
  0x84   :  { %v289_v61 = vmul.f32 %v590_v26, %v285_v54  ;;  %v290_v63 = vmul.f32 %v594_v29, %v286_v56 }
  0x85   :  { %v291_v0 = vadd.f32 0.0094388705, %v287_v57  ;;  %v292_v1 = vadd.f32 0.0094388705, %v288_v60 }
  0x86   :  { %v293_v2 = vadd.f32 0.0094388705, %v289_v61  ;;  %v294_v4 = vadd.f32 0.0094388705, %v290_v63 }
  0x87   :  { %v295_v5 = vmul.f32 %v574_v15, %v291_v0  ;;  %v296_v12 = vmul.f32 %v586_v23, %v292_v1 }
  0x88   :  { %v297_v13 = vmul.f32 %v590_v26, %v293_v2  ;;  %v298_v16 = vmul.f32 %v594_v29, %v294_v4 }
  0x89   :  { %v299_v17 = vadd.f32 1.001674, %v295_v5  ;;  %v300_v18 = vadd.f32 1.001674, %v296_v12 }
  0x8a   :  { %v301_v19 = vadd.f32 1.001674, %v297_v13  ;;  %v302_v20 = vadd.f32 1.001674, %v298_v16 }
  0x8b   :  { %v303_v21 = vmul.f32 %v574_v15, %v299_v17  ;;  %v304_v22 = vmul.f32 %v586_v23, %v300_v18 }
  0x8c   :  { %v305_v24 = vmul.f32 %v590_v26, %v301_v19  ;;  %v306_v25 = vmul.f32 %v594_v29, %v302_v20 }
  0x8d   :  { %v307_v27 = vadd.f32 2.8329768, %v303_v21  ;;  %v308_v28 = vadd.f32 2.8329768, %v304_v22 }
  0x8e   :  { %v309_v30 = vadd.f32 2.8329768, %v305_v24  ;;  %v310_v15 = vadd.f32 2.8329768, %v306_v25 }
  0x8f   :  { %v315_v32 = vsel %vm311_vm8, %v243_v36, %v307_v27  ;;  %v316_v23 = vsel %vm312_vm9, %v244_v37, %v308_v28 }
  0x90   :  { %v317_v26 = vsel %vm313_vm10, %v245_v38, %v309_v30  ;;  %v319_v41 = vmul.f32 %v498_v8, %v315_v32  ;;  %v318_v29 = vsel %vm314_vm11, %v246_v39, %v310_v15  ;;  %v320_v42 = vmul.f32 %v500_v9, %v316_v23 }
  0x91   :  { %v321_v34 = vmul.f32 %v502_v10, %v317_v26  ;;  %v322_v43 = vmul.f32 %v504_v11, %v318_v29 }
  0x92   :  { %v328_v35 = vmul.f32 %v327_v40, %v319_v41  ;;  %v329_v44 = vmul.f32 %v327_v40, %v320_v42 }
  0x93   :  { %v330_v45 = vmul.f32 %v327_v40, %v321_v34  ;;  %v331_v46 = vmul.f32 %v327_v40, %v322_v43 }
  0x94   :  { %v336_v48 = vcombine.low %v328_v35, %v329_v44 }
  0x95   :  { %v337_v33 = vcombine.low %v330_v45, %v331_v46 }
  0x96   :  { %v340_v50 = vadd.f32 %v336_v48, %v325_v31 }
  0x97   :  { %v341_v8 = vadd.f32 %v337_v33, %v326_v47 }
  0x98   :  { %v343_v51 = vadd.f32 %v342_v49, %v340_v50 }
  0x99   :  { %v344_v52 = vadd.f32 %v342_v49, %v341_v8 }
  0x9a   :  { %345 = vst [vmem:[#allocation8] sm:$0xff] %v343_v51 }
  0x9b   :  { %346 = vst [vmem:[#allocation8 + $0x8] sm:$0xff] %v344_v52 }
  0x9c   :  { %440 = shalt.err (!%p437_p3)
}
  0x9d   :  { %s441_s9 = scalar_lea.hbm %s676_s3, 256 }
  0x9e   :  { %p442_p4 = scmp.ne.s32.totalorder %s676_s3, %s441_s9  ;;  %p445_p5 = scmp.lt.u32.totalorder %s441_s9, %s676_s3 }
  0xa0   :  { %p447_p6 = pnand %p445_p5, %p442_p4 }
  0xa2   :  { %450 = shalt.err (!%p447_p6)
}
  0xa3   :  { %356 = dma.vmem_to_hbm [thread:$0]  %s354_s5, 256, %s676_s3, [#allocation5]  }
  0xa4   :  { %455 = dma.done.wait [#allocation5], 256  }
  0xa5   :  { %456 = vsyncadd [#allocation5], 4294967040 }
  0xa6   :  { %360 = vsyncpa [#allocation4], 1 }
  0xa7   :  { %361 = vsyncpa [#allocation5], 1 }
  0xa8   :  { %362 = vsyncpa [#allocation6], 1 }

</bundles_post_ra>
